<compile_context>
chip_gen: v6e
topology: v6e:2x2x1
jax: 0.10.0
libtpu: 0.0.40
codegen_flags: <defaults>
</compile_context>

<pallas_src>
import math
import jax
import jax.numpy as jnp
from jax.experimental import pallas as pl
from jax.experimental.pallas import tpu as pltpu

# norse default LIF parameters
DT = 1e-3
TAU_SYN_INV = 1.0 / 5e-3   # 200.0
TAU_MEM_INV = 1.0 / 1e-2   # 100.0
V_LEAK = 0.0
V_TH = 1.0
V_RESET = 0.0

IN_FEATS = 12
HID0 = 6
HID1 = 1

K0 = IN_FEATS + HID0        # 18: fused [input | recurrent] contraction dim, layer 0
K1 = HID0 + HID1            # 7 : fused contraction dim, layer 1
W_COLS = 8                  # packed weight buffer lane width (>= HID0 + HID1)

# packed state lane layout: [z0(6) | v0(6) | i0(6) | z1(1) | v1(1) | i1(1)]
Z0_OFF = 0
V0_OFF = HID0
I0_OFF = 2 * HID0
Z1_OFF = 3 * HID0
V1_OFF = 3 * HID0 + HID1
I1_OFF = 3 * HID0 + 2 * HID1
STATE_W = 3 * HID0 + 3 * HID1   # 21


# ----------------------------------------------------------------------------- kernel


def snn_kernel(spikes_ref, w_ref, state_in_ref, v1_seq_ref, state_out_ref):
    """One (batch_block, time_step) grid point: advance both LIF layers by one step."""
    t = pl.program_id(1)

    # State stays resident in the output block across the whole time axis.
    @pl.when(t == 0)
    def _init():
        state_out_ref[...] = state_in_ref[...]

    st = state_out_ref[...]                          # (TB, 21)
    z0 = st[:, Z0_OFF:Z0_OFF + HID0]
    v0 = st[:, V0_OFF:V0_OFF + HID0]
    i0 = st[:, I0_OFF:I0_OFF + HID0]
    z1 = st[:, Z1_OFF:Z1_OFF + HID1]
    v1 = st[:, V1_OFF:V1_OFF + HID1]
    i1 = st[:, I1_OFF:I1_OFF + HID1]

    w = w_ref[...]                                   # (18, 8), pre-transposed + fused
    w0 = w[:, :HID0]                                 # (18, 6) = [W0_in.T ; W0_rec.T]
    w1 = w[:K1, HID0:HID0 + HID1]                    # (7, 1)  = [W1_in.T ; W1_rec.T]

    inp = spikes_ref[0]                              # (TB, 12)

    # ---- layer 0: LIFCell(12, 6) -------------------------------------------------
    v0_dec = v0 + DT * TAU_MEM_INV * ((V_LEAK - v0) + i0)
    i0_dec = i0 - DT * TAU_SYN_INV * i0
    z0_new = (v0_dec > V_TH).astype(jnp.float32)     # heaviside forward
    v0_new = (1.0 - z0_new) * v0_dec + z0_new * V_RESET
    x0 = jnp.concatenate([inp, z0], axis=1)          # (TB, 18): fused input|recurrent
    i0_new = i0_dec + jnp.dot(x0, w0, preferred_element_type=jnp.float32)

    # ---- layer 1: LIFCell(6, 1), fed by layer-0 new spikes ------------------------
    v1_dec = v1 + DT * TAU_MEM_INV * ((V_LEAK - v1) + i1)
    i1_dec = i1 - DT * TAU_SYN_INV * i1
    z1_new = (v1_dec > V_TH).astype(jnp.float32)
    v1_new = (1.0 - z1_new) * v1_dec + z1_new * V_RESET
    x1 = jnp.concatenate([z0_new, z1], axis=1)       # (TB, 7)
    i1_new = i1_dec + jnp.dot(x1, w1, preferred_element_type=jnp.float32)

    # Updated packed state (stays in VMEM; written back to HBM once per batch block).
    state_out_ref[...] = jnp.concatenate(
        [z0_new, v0_new, i0_new, z1_new, v1_new, i1_new], axis=1)

    # Per-step module output: s1.v
    v1_seq_ref[0] = v1_new


# ----------------------------------------------------------------------------- wrapper


def _pick_batch_tile(B):
    """Batch tile: whole batch if tiny / non-multiple-of-8, else a multiple-of-8 tile."""
    if B % 8 != 0:
        return B
    for tb in (1024, 512, 256, 128, 64, 32, 16, 8):
        if tb <= B and B % tb == 0:
            return tb
    return B


@jax.jit
def snn_forward_seq(spikes_seq, w_packed, state_in):
    """Run T LIF steps in one pallas_call.

    spikes_seq: (T, B, 12) f32
    w_packed  : (18, 8)    f32 packed [W0_in.T;W0_rec.T | W1_in.T;W1_rec.T]
    state_in  : (B, 21)    f32 packed [z0|v0|i0|z1|v1|i1]
    returns   : (v1_seq (T, B, 1), state_out (B, 21))
    """
    T, B, _ = spikes_seq.shape
    TB = _pick_batch_tile(B)
    grid = (B // TB, T)

    return pl.pallas_call(
        snn_kernel,
        out_shape=(
            jax.ShapeDtypeStruct((T, B, HID1), jnp.float32),   # per-step s1.v
            jax.ShapeDtypeStruct((B, STATE_W), jnp.float32),   # final packed state
        ),
        grid_spec=pltpu.PrefetchScalarGridSpec(
            num_scalar_prefetch=0,
            grid=grid,
            in_specs=[
                pl.BlockSpec((1, TB, IN_FEATS), lambda b, t: (t, b, 0)),   # spikes
                pl.BlockSpec((K0, W_COLS), lambda b, t: (0, 0)),           # weights (resident)
                pl.BlockSpec((TB, STATE_W), lambda b, t: (b, 0)),          # initial state
            ],
            out_specs=[
                pl.BlockSpec((1, TB, HID1), lambda b, t: (t, b, 0)),       # v1 per step
                pl.BlockSpec((TB, STATE_W), lambda b, t: (b, 0)),          # final state (resident)
            ],
        ),
        input_output_aliases={2: 1},   # state_in -> state_out, in-place update
        compiler_params=pltpu.CompilerParams(
            dimension_semantics=("parallel", "arbitrary")),
    )(spikes_seq, w_packed, state_in)


def pack_weights(w0_in, w0_rec, w1_in, w1_rec):
    """Pre-transpose and fuse [input|recurrent] weights; pack both layers into one buffer."""
    w0 = jnp.concatenate([w0_in.T, w0_rec.T], axis=0)            # (18, 6)
    w1 = jnp.concatenate([w1_in.T, w1_rec.T], axis=0)            # (7, 1)
    buf = jnp.zeros((K0, W_COLS), jnp.float32)
    buf = buf.at[:, :HID0].set(w0)
    buf = buf.at[:K1, HID0:HID0 + HID1].set(w1)
    return buf


def init_state(B):
    st = jnp.zeros((B, STATE_W), jnp.float32)
    st = st.at[:, V0_OFF:V0_OFF + HID0].set(V_LEAK)
    st = st.at[:, V1_OFF:V1_OFF + HID1].set(V_LEAK)
    return st


class SNNetwork:
    """Stateful wrapper mirroring the PyTorch module (state carried across calls)."""

    def __init__(self, key):
        k0, k1, k2, k3 = jax.random.split(key, 4)
        # norse SNNCell init: randn(hidden, in) * sqrt(2 / hidden)
        self.w0_in = jax.random.normal(k0, (HID0, IN_FEATS), jnp.float32) * math.sqrt(2.0 / HID0)
        self.w0_rec = jax.random.normal(k1, (HID0, HID0), jnp.float32) * math.sqrt(2.0 / HID0)
        self.w1_in = jax.random.normal(k2, (HID1, HID0), jnp.float32) * math.sqrt(2.0 / HID1)
        self.w1_rec = jax.random.normal(k3, (HID1, HID1), jnp.float32) * math.sqrt(2.0 / HID1)
        self.w_packed = pack_weights(self.w0_in, self.w0_rec, self.w1_in, self.w1_rec)
        self._state = None   # packed (B, 21)

    def _ensure_state(self, B):
        if self._state is None:
            self._state = init_state(B)

    def forward(self, spikes):
        """One time step, exactly the PyTorch module semantics: returns s1.v.squeeze()."""
        B = spikes.shape[0]
        self._ensure_state(B)
        v1_seq, self._state = snn_forward_seq(spikes[None], self.w_packed, self._state)
        return jnp.squeeze(v1_seq[0])

    def forward_sequence(self, spikes_seq):
        """Fused multi-step path: spikes_seq (T, B, 12) -> per-step s1.v of shape (T, B)."""
        _, B, _ = spikes_seq.shape
        self._ensure_state(B)
        v1_seq, self._state = snn_forward_seq(spikes_seq, self.w_packed, self._state)
        return jnp.squeeze(v1_seq, axis=-1)


# ----------------------------------------------------------------------------- reference


def _lif_step_ref(inp, z, v, i, w_in, w_rec):
    v_dec = v + DT * TAU_MEM_INV * ((V_LEAK - v) + i)
    i_dec = i - DT * TAU_SYN_INV * i
    z_new = (v_dec - V_TH > 0.0).astype(jnp.float32)
    v_new = (1.0 - z_new) * v_dec + z_new * V_RESET
    i_new = (i_dec
             + jnp.dot(inp, w_in.T, preferred_element_type=jnp.float32)
             + jnp.dot(z, w_rec.T, preferred_element_type=jnp.float32))
    return z_new, v_new, i_new


# ----------------------------------------------------------------------------- test


if __name__ == "__main__":
    key = jax.random.PRNGKey(0)
    k_w, k_x = jax.random.split(key)

    batch, T = 2, 8
    spikes_seq = (jax.random.uniform(k_x, (T, batch, IN_FEATS)) > 0.5).astype(jnp.float32)

    net = SNNetwork(k_w)

    # Pure-JAX reference stepped over T steps (same state convention as the module).
    s0 = (jnp.zeros((batch, HID0)), jnp.full((batch, HID0), V_LEAK), jnp.zeros((batch, HID0)))
    s1 = (jnp.zeros((batch, HID1)), jnp.full((batch, HID1), V_LEAK), jnp.zeros((batch, HID1)))
    ref_vs = []
    for t in range(T):
        z0, v0, i0 = _lif_step_ref(spikes_seq[t], *s0, net.w0_in, net.w0_rec)
        z1, v1, i1 = _lif_step_ref(z0, *s1, net.w1_in, net.w1_rec)
        s0, s1 = (z0, v0, i0), (z1, v1, i1)
        ref_vs.append(jnp.squeeze(v1))
    ref_vs = jnp.stack(ref_vs)                                       # (T, batch)
    ref_state = jnp.concatenate([*s0, *s1], axis=1)                  # (batch, 21)

    # (a) Fused sequence path: one pallas_call for all T steps.
    out_seq = jax.block_until_ready(net.forward_sequence(spikes_seq))
    assert out_seq.shape == (T, batch), f"unexpected output shape {out_seq.shape}"
    assert jnp.allclose(out_seq, ref_vs, atol=1e-4), (out_seq, ref_vs)
    assert jnp.allclose(net._state, ref_state, atol=1e-4)

    # (b) Per-step path with state carried across calls (PyTorch forward() semantics).
    net2 = SNNetwork(k_w)   # same key -> same weights
    last = None
    for t in range(T):
        last = net2.forward(spikes_seq[t])
    last = jax.block_until_ready(last)
    assert last.shape == (batch,), f"unexpected output shape {last.shape}"
    assert jnp.allclose(last, ref_vs[-1], atol=1e-4), (last, ref_vs[-1])
    assert jnp.allclose(net2._state, ref_state, atol=1e-4)

    print("KERNEL_OK")
</pallas_src>

<mosaic_0001>
module attributes {stable_mosaic.version = 11 : i64} {
  func.func @snn_kernel(%arg0: i32, %arg1: i32, %arg2: memref<1x2x12xf32, #tpu.memory_space<vmem>>, %arg3: memref<18x8xf32, #tpu.memory_space<vmem>>, %arg4: memref<2x21xf32, #tpu.memory_space<vmem>>, %arg5: memref<1x2x1xf32, #tpu.memory_space<vmem>>, %arg6: memref<2x21xf32, #tpu.memory_space<vmem>>) attributes {dimension_semantics = [#tpu.dimension_semantics<parallel>, #tpu.dimension_semantics<arbitrary>], iteration_bounds = array<i64: 1, 8>, scalar_prefetch = 0 : i64, scratch_operands = 0 : i64, tpu.core_type = #tpu.core_type<tc>, window_params = [{transform_indices = @transform_0, window_bounds = array<i64: 1, 2, 12>}, {pipeline_mode = #tpu.pipeline_mode<synchronous>, transform_indices = @transform_1, window_bounds = array<i64: 18, 8>}, {transform_indices = @transform_2, window_bounds = array<i64: 2, 21>}, {transform_indices = @transform_3, window_bounds = array<i64: 1, 2, 1>}, {transform_indices = @transform_4, window_bounds = array<i64: 2, 21>}]} {
    %c0_i32 = arith.constant 0 : i32
    %0 = arith.cmpi eq, %arg1, %c0_i32 : i32
    %1 = arith.extui %0 : i1 to i32
    %c0_i32_0 = arith.constant 0 : i32
    %2 = arith.cmpi ne, %1, %c0_i32_0 : i32
    scf.if %2 {
      %c0_25 = arith.constant 0 : index
      %c0_26 = arith.constant 0 : index
      %64 = vector.load %arg4[%c0_25, %c0_26] : memref<2x21xf32, #tpu.memory_space<vmem>>, vector<2x21xf32>
      %c0_27 = arith.constant 0 : index
      %c0_28 = arith.constant 0 : index
      %65 = vector.load %arg6[%c0_27, %c0_28] : memref<2x21xf32, #tpu.memory_space<vmem>>, vector<2x21xf32>
      tpu.vector_store %arg6[%c0_27, %c0_28], %64 {strides = array<i32>} : memref<2x21xf32, #tpu.memory_space<vmem>>, vector<2x21xf32>,
    } else {
    }
    %c0 = arith.constant 0 : index
    %c0_1 = arith.constant 0 : index
    %3 = vector.load %arg6[%c0, %c0_1] : memref<2x21xf32, #tpu.memory_space<vmem>>, vector<2x21xf32>
    %4 = vector.extract_strided_slice %3 {offsets = [0, 0], sizes = [2, 6], strides = [1, 1]} : vector<2x21xf32> to vector<2x6xf32>
    %5 = vector.extract_strided_slice %3 {offsets = [0, 6], sizes = [2, 6], strides = [1, 1]} : vector<2x21xf32> to vector<2x6xf32>
    %6 = vector.extract_strided_slice %3 {offsets = [0, 12], sizes = [2, 6], strides = [1, 1]} : vector<2x21xf32> to vector<2x6xf32>
    %7 = vector.extract_strided_slice %3 {offsets = [0, 18], sizes = [2, 1], strides = [1, 1]} : vector<2x21xf32> to vector<2x1xf32>
    %8 = vector.extract_strided_slice %3 {offsets = [0, 19], sizes = [2, 1], strides = [1, 1]} : vector<2x21xf32> to vector<2x1xf32>
    %9 = vector.extract_strided_slice %3 {offsets = [0, 20], sizes = [2, 1], strides = [1, 1]} : vector<2x21xf32> to vector<2x1xf32>
    %c0_2 = arith.constant 0 : index
    %c0_3 = arith.constant 0 : index
    %10 = vector.load %arg3[%c0_2, %c0_3] : memref<18x8xf32, #tpu.memory_space<vmem>>, vector<18x8xf32>
    %11 = vector.extract_strided_slice %10 {offsets = [0, 0], sizes = [18, 6], strides = [1, 1]} : vector<18x8xf32> to vector<18x6xf32>
    %12 = vector.extract_strided_slice %10 {offsets = [0, 6], sizes = [7, 1], strides = [1, 1]} : vector<18x8xf32> to vector<7x1xf32>
    %c0_4 = arith.constant 0 : index
    %c0_5 = arith.constant 0 : index
    %c0_6 = arith.constant 0 : index
    %13 = vector.load %arg2[%c0_4, %c0_5, %c0_6] : memref<1x2x12xf32, #tpu.memory_space<vmem>>, vector<1x2x12xf32>
    %14 = vector.shape_cast %13 : vector<1x2x12xf32> to vector<2x12xf32>
    %cst = arith.constant 0.000000e+00 : f32
    %15 = vector.broadcast %cst : f32 to vector<2x6xf32>
    %16 = arith.subf %15, %5 : vector<2x6xf32>
    %17 = arith.addf %16, %6 : vector<2x6xf32>
    %cst_7 = arith.constant 1.000000e-01 : f32
    %18 = vector.broadcast %cst_7 : f32 to vector<2x6xf32>
    %19 = arith.mulf %18, %17 : vector<2x6xf32>
    %20 = arith.addf %5, %19 : vector<2x6xf32>
    %cst_8 = arith.constant 2.000000e-01 : f32
    %21 = vector.broadcast %cst_8 : f32 to vector<2x6xf32>
    %22 = arith.mulf %21, %6 : vector<2x6xf32>
    %23 = arith.subf %6, %22 : vector<2x6xf32>
    %cst_9 = arith.constant 1.000000e+00 : f32
    %24 = vector.broadcast %cst_9 : f32 to vector<2x6xf32>
    %25 = arith.cmpf ogt, %20, %24 : vector<2x6xf32>
    %26 = arith.extui %25 : vector<2x6xi1> to vector<2x6xi32>
    %27 = arith.sitofp %26 : vector<2x6xi32> to vector<2x6xf32>
    %cst_10 = arith.constant 1.000000e+00 : f32
    %28 = vector.broadcast %cst_10 : f32 to vector<2x6xf32>
    %29 = arith.subf %28, %27 : vector<2x6xf32>
    %30 = arith.mulf %29, %20 : vector<2x6xf32>
    %cst_11 = arith.constant 0.000000e+00 : f32
    %31 = vector.broadcast %cst_11 : f32 to vector<2x6xf32>
    %32 = arith.mulf %27, %31 : vector<2x6xf32>
    %33 = arith.addf %30, %32 : vector<2x6xf32>
    %34 = tpu.concatenate %14, %4 in 1 : vector<2x12xf32>, vector<2x6xf32> -> vector<2x18xf32>
    %cst_12 = arith.constant dense<0.000000e+00> : vector<2x6xf32>
    %35 = tpu.matmul %34, %11, %cst_12 {dimension_numbers = #tpu.dot_dimension_numbers<[1], [0], [0], [1], [0, 0, 1, 1], [], []>} : vector<2x18xf32>, vector<18x6xf32>, vector<2x6xf32> -> vector<2x6xf32>
    %36 = arith.addf %23, %35 : vector<2x6xf32>
    %cst_13 = arith.constant 0.000000e+00 : f32
    %37 = vector.broadcast %cst_13 : f32 to vector<2x1xf32>
    %38 = arith.subf %37, %8 : vector<2x1xf32>
    %39 = arith.addf %38, %9 : vector<2x1xf32>
    %cst_14 = arith.constant 1.000000e-01 : f32
    %40 = vector.broadcast %cst_14 : f32 to vector<2x1xf32>
    %41 = arith.mulf %40, %39 : vector<2x1xf32>
    %42 = arith.addf %8, %41 : vector<2x1xf32>
    %cst_15 = arith.constant 2.000000e-01 : f32
    %43 = vector.broadcast %cst_15 : f32 to vector<2x1xf32>
    %44 = arith.mulf %43, %9 : vector<2x1xf32>
    %45 = arith.subf %9, %44 : vector<2x1xf32>
    %cst_16 = arith.constant 1.000000e+00 : f32
    %46 = vector.broadcast %cst_16 : f32 to vector<2x1xf32>
    %47 = arith.cmpf ogt, %42, %46 : vector<2x1xf32>
    %48 = arith.extui %47 : vector<2x1xi1> to vector<2x1xi32>
    %49 = arith.sitofp %48 : vector<2x1xi32> to vector<2x1xf32>
    %cst_17 = arith.constant 1.000000e+00 : f32
    %50 = vector.broadcast %cst_17 : f32 to vector<2x1xf32>
    %51 = arith.subf %50, %49 : vector<2x1xf32>
    %52 = arith.mulf %51, %42 : vector<2x1xf32>
    %cst_18 = arith.constant 0.000000e+00 : f32
    %53 = vector.broadcast %cst_18 : f32 to vector<2x1xf32>
    %54 = arith.mulf %49, %53 : vector<2x1xf32>
    %55 = arith.addf %52, %54 : vector<2x1xf32>
    %56 = tpu.concatenate %27, %7 in 1 : vector<2x6xf32>, vector<2x1xf32> -> vector<2x7xf32>
    %cst_19 = arith.constant dense<0.000000e+00> : vector<2x1xf32>
    %57 = tpu.matmul %56, %12, %cst_19 {dimension_numbers = #tpu.dot_dimension_numbers<[1], [0], [0], [1], [0, 0, 1, 1], [], []>} : vector<2x7xf32>, vector<7x1xf32>, vector<2x1xf32> -> vector<2x1xf32>
    %58 = arith.addf %45, %57 : vector<2x1xf32>
    %59 = tpu.concatenate %27, %33, %36, %49, %55, %58 in 1 : vector<2x6xf32>, vector<2x6xf32>, vector<2x6xf32>, vector<2x1xf32>, vector<2x1xf32>, vector<2x1xf32> -> vector<2x21xf32>
    %c0_20 = arith.constant 0 : index
    %c0_21 = arith.constant 0 : index
    %60 = vector.load %arg6[%c0_20, %c0_21] : memref<2x21xf32, #tpu.memory_space<vmem>>, vector<2x21xf32>
    tpu.vector_store %arg6[%c0_20, %c0_21], %59 {strides = array<i32>} : memref<2x21xf32, #tpu.memory_space<vmem>>, vector<2x21xf32>,
    %c0_22 = arith.constant 0 : index
    %c0_23 = arith.constant 0 : index
    %c0_24 = arith.constant 0 : index
    %61 = vector.load %arg5[%c0_22, %c0_23, %c0_24] : memref<1x2x1xf32, #tpu.memory_space<vmem>>, vector<1x2x1xf32>
    %62 = vector.shape_cast %61 : vector<1x2x1xf32> to vector<2x1xf32>
    %63 = vector.shape_cast %55 : vector<2x1xf32> to vector<1x2x1xf32>
    tpu.vector_store %arg5[%c0_22, %c0_23, %c0_24], %63 {strides = array<i32>} : memref<1x2x1xf32, #tpu.memory_space<vmem>>, vector<1x2x1xf32>,
    return
  }
  func.func @transform_0(%arg0: i32, %arg1: i32) -> (i32, i32, i32) {
    %c0_i32 = arith.constant 0 : i32
    %c0_i32_0 = arith.constant 0 : i32
    return %arg1, %arg0, %c0_i32 : i32, i32, i32
  }
  func.func @transform_1(%arg0: i32, %arg1: i32) -> (i32, i32) {
    %c0_i32 = arith.constant 0 : i32
    %c0_i32_0 = arith.constant 0 : i32
    %c0_i32_1 = arith.constant 0 : i32
    return %c0_i32, %c0_i32_0 : i32, i32
  }
  func.func @transform_2(%arg0: i32, %arg1: i32) -> (i32, i32) {
    %c0_i32 = arith.constant 0 : i32
    %c0_i32_0 = arith.constant 0 : i32
    return %arg0, %c0_i32 : i32, i32
  }
  func.func @transform_3(%arg0: i32, %arg1: i32) -> (i32, i32, i32) {
    %c0_i32 = arith.constant 0 : i32
    %c0_i32_0 = arith.constant 0 : i32
    return %arg1, %arg0, %c0_i32 : i32, i32, i32
  }
  func.func @transform_4(%arg0: i32, %arg1: i32) -> (i32, i32) {
    %c0_i32 = arith.constant 0 : i32
    %c0_i32_0 = arith.constant 0 : i32
    return %arg0, %c0_i32 : i32, i32
  }
}

</mosaic_0001>

<bundles_post_ra>
// kernel: snn_forward_seq.1
= control target key start
LH: loop header
LB: loop body
LE: loop exit
PB: predicated region body
PF: predicated region fallthrough
CT: control target
= control target key end

     0   :  { %s740_s15 = smov 0   ;;  %s742_s16 = smov 0   ;;  %s820_s0 = inlined_call_operand.vmem [shape: f32[8,2,12], index: 0, kind: input, shape index: {}]   ;;  %s821_s1 = inlined_call_operand.vmem [shape: f32[18,8], index: 1, kind: input, shape index: {}]   ;;  %s822_s2 = inlined_call_operand.vmem [shape: f32[2,21], index: 2, kind: input, shape index: {}, may-alias: {2,4}]   ;;  %s823_s3 = inlined_call_operand.vmem [shape: f32[8,2,1], index: 3, kind: output, shape index: {0}]   ;;  %s824_s4 = inlined_call_operand.vmem [shape: f32[2,21], index: 4, kind: output, shape index: {1}, may-alias: {2,4}]  }
   0x1   :  { %s744_s17 = smov 0  }
   0x2 LB: > { %s24_s18 = sadd.s32 1, %s701_s16  ;;  %p618_p0 = scmp.ge.s32.totalorder %s705_s17, 1  ;;  %s705_s17 = sphi %s744_s17, %s15_s17   ;;  %s701_s16 = sphi %s742_s16, %s826_s16   ;;  %s697_s15 = sphi %s740_s15, %s825_s15  }
   0x3   : > { %p25_p1 = scmp.ge.s32.totalorder %s24_s18, 8  ;;  %p192_p2 = scmp.lt.s32.totalorder %s705_s17, 9 }
   0x5   : > { %s828_s18 = smov (%p25_p1, %s24_s18), 0  ;;  %p193_p3 = pnand %p618_p0, %p192_p2 }
   0x6   : > { %p230_p4 = scmp.lt.s32.totalorder (!%p193_p3), %s697_s15, 7  ;;  %p621_p5 = scmp.ne.s32.totalorder (!%p193_p3), %s697_s15, 0 }
   0x7   : > { %196 = sbr.rel (%p193_p3) target bundleno = 583 (0x247), region = 32 }
   0xc   : > { %s231_s19 = scalar_select %p230_p4, %s697_s15, 7 }
   0xd   : > { %255 = sbr.rel (%p621_p5) target bundleno = 20 (0x14), region = 36 }
   0xe   : > { %s619_s20 = sshll.u32 %s231_s19, 1 }
   0xf   : > { %s761_s23 = scalar_lea.vmem %s820_s0, %s619_s20  ;;  %s766_s26 = scalar_lea.vmem %s823_s3, %s619_s20 }
  0x12   : > { %v256_v0 = vld [vmem:[%s822_s2] sm:$0x3]  ;;  %vm257_vm0 = vcmask 164864  }
  0x13   : > { %258 = vst.msk [vmem:[%s824_s4] sm:$0x3] %vm257_vm0, %v256_v0 }
  0x14 PF: > { %vm290_vm1 = vcmask 1041408   ;;  %s707_s7 = smov 122   ;;  %v708_v2 = vmov 0.0   ;;  %v262_v3 = vld [vmem:[%s821_s1 + $0x10] sm:$0x3]  ;;  %v261_v4 = vld [vmem:[%s821_s1 + $0x8] sm:$0xff] }
  0x15   : > { %637 = vmatprep.subr.mxu0 %v708_v2  ;;  %646 = vmatprep.subr.mxu1 %v708_v2  ;;  %v260_v5 = vld [vmem:[%s821_s1] sm:$0xff]  ;;  %vm709_vm2 = vmmov 0   ;;  %s710_s14 = smov 12   ;;  %vm284_vm3 = vcmask 97280   ;;  %vm286_vm4 = vcmask 146432   ;;  %vm398_vm5 = vcmask 1046528  }
  0x16   : > { %638 = vmatpush3.msk.msra.mxu0 %vm290_vm1, %v262_v3  ;;  %643 = vmatprep.mubr.msk.f32.mxu0 %vm709_vm2, %v708_v2  ;;  %v263_v9 = vld [vmem:[%s761_s23] sm:$0x3]  ;;  %s711_s15 = smov 116   ;;  %s712_s19 = smov 127   ;;  %vm389_vm7 = vcmask 48128   ;;  %vm394_vm8 = vcmask 56320  }
  0x17   : > { %639 = vmatprep.subr.mxu0 %v708_v2  ;;  %648 = vmatprep.mubr.msk.f32.mxu1 %vm709_vm2, %v708_v2  ;;  %vm483_vm10 = vcmask 154624   ;;  %s713_s20 = smov 20   ;;  %s714_s21 = smov 109   ;;  %vm485_vm11 = vcmask 162816   ;;  %vm487_vm12 = vcmask 164864   ;;  %vm493_vm13 = vcmask 1024  }
  0x18   : > { %640 = vmatpush3.msra.mxu0 %v261_v4 }
  0x19   : > { %641 = vmatprep.subr.mxu0 %v708_v2 }
  0x1a   : > { %v777_v1 = vld [vmem:[%s824_s4] sm:$0x3]  ;;  %642 = vmatpush3.msra.mxu0 %v260_v5 }
  0x1b   : > { %266 = vrot.lane.b32.xlu0 %v777_v1, %s707_s7  ;;  %v264_v6 = vsub.f32 0.0, %v777_v1  ;;  %v272_v35 = vmul.f32 0.2, %v777_v1 }
  0x1d   : > { %v273_v36 = vsub.f32 %v777_v1, %v272_v35 }
  0x1f   : > { %281 = vrot.lane.b32.xlu0 %v777_v1, %s710_s14 }
  0x23   : > { %392 = vrot.lane.b32.xlu0 %v260_v5, %s707_s7 }
  0x8d   : > { %v267_v7 = vpop.permute.xlu0 %266 }
  0x8e   : > { %v269_v8 = vadd.f32 %v267_v7, %v264_v6 }
  0x90   : > { %v270_v10 = vmul.f32 0.1, %v269_v8 }
  0x91   : > { %v282_v11 = vpop.permute.xlu0 %281 }
  0x92   : > { %v271_v12 = vadd.f32 %v270_v10, %v777_v1  ;;  %v285_v13 = vsel %vm284_vm3, %v263_v9, %v282_v11 }
  0x93   : > { %644 = vmatmul.mubr.msk.f32.vlgmr.msra.gmra.mxu0 %vm286_vm4, %v285_v13 }
  0x94   : > { %vm274_vm6 = vcmp.gt.f32.partialorder %v271_v12, 1.0 }
  0x95   : > { %v622_v14 = vsel %vm274_vm6, 1.0, %v708_v2  ;;  %v393_v15 = vpop.permute.xlu0 %392 }
  0x96   : > { %383 = vrot.lane.b32.xlu1 %v622_v14, %s707_s7  ;;  %v277_v16 = vsub.f32 1.0, %v622_v14  ;;  %647 = vmatpush3.msk.msra.mxu1 %vm398_vm5, %v393_v15  ;;  %v279_v18 = vmul.f32 0.0, %v622_v14 }
  0x98   : > { %v278_v17 = vmul.f32 %v277_v16, %v271_v12 }
  0x9a   : > { %v280_v19 = vadd.f32 %v279_v18, %v278_v17  ;;  %386 = vrot.lane.b32.xlu1 %v777_v1, %s711_s15 }
  0x9e   : > { %369 = vrot.lane.b32.xlu1 %v777_v1, %s712_s19 }
 0x108   : > { %v384_v20 = vpop.permute.xlu1 %383 }
 0x109   : > { %v480_v21 = vsel %vm389_vm7, %v384_v20, %v280_v19 }
 0x10c   : > { %v387_v22 = vpop.permute.xlu1 %386 }
 0x10d   : > { %v390_v23 = vsel %vm389_vm7, %v384_v20, %v387_v22 }
 0x10e   : > { %649 = vmatmul.mubr.msk.f32.vlgmr.msra.gmra.mxu1 %vm394_vm8, %v390_v23 }
 0x110   : > { %v370_v24 = vpop.permute.xlu1 %369 }
 0x111   : > { %v372_v25 = vadd.f32 %v370_v24, %v264_v6 }
 0x113   : > { %v373_v26 = vmul.f32 0.1, %v372_v25 }
 0x115   : > { %v374_v27 = vadd.f32 %v373_v26, %v777_v1 }
 0x117   : > { %vm375_vm9 = vcmp.gt.f32.partialorder %v374_v27, 1.0 }
 0x118   : > { %v625_v28 = vsel %vm375_vm9, 1.0, %v708_v2 }
 0x119   : > { %v378_v29 = vsub.f32 1.0, %v625_v28  ;;  %v380_v30 = vmul.f32 0.0, %v625_v28 }
 0x11b   : > { %v379_v31 = vmul.f32 %v378_v29, %v374_v27 }
 0x11d   : > { %v381_v32 = vadd.f32 %v380_v30, %v379_v31 }
 0x153   : > { %v360_v33 = vpop.f32.mrf.mxu0 }
 0x154   : > { %365 = vrot.lane.b32.xlu0 %v360_v33, %s710_s14 }
 0x155   : > { %v645_v34 = vpop.f32.mrf.mxu0 }
 0x158   : > { %477 = vrot.lane.b32.xlu0 %v625_v28, %s712_s19 }
 0x1c6   : > { %v366_v37 = vpop.permute.xlu0 %365 }
 0x1c7   : > { %v368_v38 = vadd.f32 %v366_v37, %v273_v36 }
 0x1c9   : > { %v481_v39 = vsel %vm284_vm3, %v480_v21, %v368_v38 }
 0x1ca   : > { %v478_v40 = vpop.permute.xlu0 %477 }
 0x1cb   : > { %v482_v41 = vsel %vm286_vm4, %v481_v39, %v478_v40 }
 0x1cc   : > { %v484_v42 = vsel %vm483_vm10, %v482_v41, %v381_v32 }
 0x1ce   : > { %v467_v43 = vpop.f32.mrf.mxu1 }
 0x1cf   : > { %472 = vrot.lane.b32.xlu1 %v467_v43, %s713_s20 }
 0x1d0   : > { %v650_v44 = vpop.f32.mrf.mxu1 }
 0x1d3   : > { %490 = vrot.lane.b32.xlu1 %v381_v32, %s714_s21 }
 0x241   : > { %v473_v45 = vpop.permute.xlu1 %472 }
 0x242   : > { %v475_v46 = vadd.f32 %v473_v45, %v273_v36 }
 0x244   : > { %v486_v47 = vsel %vm485_vm11, %v484_v42, %v475_v46 }
 0x245   : > { %488 = vst.msk [vmem:[%s824_s4] sm:$0x3] %vm487_vm12, %v486_v47  ;;  %v491_v48 = vpop.permute.xlu1 %490 }
 0x246   : > { %494 = vst.msk [vmem:[%s766_s26] sm:$0x3] %vm493_vm13, %v491_v48 }
 0x247 PF: > { %s15_s17 = sadd.s32 1, %s705_s17   ;;  %s825_s15 = smov %s701_s16 }
 0x248   : > { %p12_p6 = scmp.ge.s32.totalorder %s15_s17, 10   ;;  %s826_s16 = smov %s828_s18 }
 0x24a   :  { %14 = sbr.rel (!%p12_p6) target bundleno = 2 (0x2), region = 81 }

</bundles_post_ra>
